<compile_context>
chip_gen: v6e
topology: v6e:2x2x1
jax: 0.10.0
libtpu: 0.0.40
codegen_flags: <defaults>
</compile_context>

<pallas_src>
import functools
import math

import numpy as np
import jax
import jax.numpy as jnp
from jax import lax
from jax.experimental import pallas as pl
from jax.experimental.pallas import tpu as pltpu


# ----------------------------------------------------------------------------
# Generation-aware VMEM budget helper
# ----------------------------------------------------------------------------
def _vmem_capacity_bytes() -> int:
    try:
        return int(pltpu.get_tpu_info().vmem_capacity_bytes)
    except Exception:
        return 64 * 2**20  # conservative (v7x per-TC figure)


# ----------------------------------------------------------------------------
# PositionalEmbedding table (built once, like the torch module's __init__)
# ----------------------------------------------------------------------------
def _pe_flat_kernel(c1_ref, c0_ref, o_ref, *, tokens_per_row: int):
    # o_ref is a (tile_r, 128) lane-dense slab of the flattened PE table.
    # flat f = r*128 + lane ; pos = f // d_model ; col = f % d_model
    # angle(f) = pos*scale(col) + phase(col) = base_pos(r)*c1(lane) + c0(lane)
    # (c1/c0 precomputed on host in f64 and hoisted; jnp.sin lowers to
    #  range-reduction + polynomial on the VALU, fine for one-time init work)
    i = pl.program_id(0)
    tile_r = o_ref.shape[0]
    base = (i * tile_r + lax.broadcasted_iota(jnp.int32, (tile_r, 1), 0)) * tokens_per_row
    o_ref[...] = jnp.sin(base.astype(jnp.float32) * c1_ref[...] + c0_ref[...])


def _pick_pe_tile(n_rows: int) -> int:
    # Big lane-dense blocks, but keep >= 2 grid blocks when possible (v7x).
    cap = n_rows if n_rows < 16 else min(n_rows // 2, 1024)
    for t in range(cap, 0, -1):
        if n_rows % t == 0 and (t % 8 == 0 or t == n_rows):
            return t
    return n_rows


def make_positional_table(d_model: int, max_len: int) -> jax.Array:
    """(max_len, d_model) float32 table matching the torch loops exactly:
       pe[p, c] = sin(p * 10000**(-2c/d))  for even c
                = cos(p * 10000**(-2c/d))  for odd  c   (own exponent per column)."""
    if 128 % d_model != 0 or (max_len * d_model) % 128 != 0:
        # TODO(synk): lane-dense Pallas path needs 128 % d_model == 0; other widths
        # fall back to host precompute (still one-time init work).
        pos = np.arange(max_len, dtype=np.float64)[:, None]
        col = np.arange(d_model, dtype=np.float64)[None, :]
        scale = 10000.0 ** (-2.0 * col / d_model)
        phase = np.where(np.arange(d_model) % 2 == 0, 0.0, math.pi / 2.0)
        return jnp.asarray(np.sin(pos * scale + phase), dtype=jnp.float32)

    tokens_per_row = 128 // d_model
    n_rows = (max_len * d_model) // 128

    # Per-lane constants, precomputed on host in float64.
    lane = np.arange(128)
    col = lane % d_model
    scale = 10000.0 ** (-2.0 * col.astype(np.float64) / d_model)
    phase = np.where(col % 2 == 0, 0.0, math.pi / 2.0)
    c1 = scale.astype(np.float32)[None, :]                                  # (1,128)
    c0 = ((lane // d_model) * scale + phase).astype(np.float32)[None, :]    # (1,128)

    tile_r = _pick_pe_tile(n_rows)
    flat = pl.pallas_call(
        functools.partial(_pe_flat_kernel, tokens_per_row=tokens_per_row),
        out_shape=jax.ShapeDtypeStruct((n_rows, 128), jnp.float32),
        grid_spec=pltpu.PrefetchScalarGridSpec(
            num_scalar_prefetch=0,
            grid=(n_rows // tile_r,),
            in_specs=[
                # Constant-index (1,128) rows; tiny.  TODO(synk): for huge tables
                # single-buffer these with pipeline_mode=pl.Buffered(1).
                pl.BlockSpec((1, 128), lambda i: (0, 0)),
                pl.BlockSpec((1, 128), lambda i: (0, 0)),
            ],
            out_specs=pl.BlockSpec((tile_r, 128), lambda i: (i, 0)),
        ),
        compiler_params=pltpu.CompilerParams(dimension_semantics=("parallel",)),
    )(jnp.asarray(c1), jnp.asarray(c0))
    return flat.reshape(max_len, d_model)


# ----------------------------------------------------------------------------
# One-time prep: fold the language embedding into the token table.
# lang_id(token) is a pure function of the token id (vocab membership with
# torch precedence ms(3) > eng(2) > chi(1) > other(0)), so
#   fused[v] = token_table[v] + language_table[lang_id(v)]
# is exactly equivalent and removes ALL per-token membership compares from the
# forward path (O(V) once instead of O(B*S) per forward).
# ----------------------------------------------------------------------------
def _fuse_tables_kernel(ms_ref, eng_ref, chi_ref, tok_ref, lang_ref, o_ref):
    V = tok_ref.shape[0]
    row_ids = lax.broadcasted_iota(jnp.int32, (V, 1), 0)

    def member(vref):
        if vref.shape[0] == 0:          # empty vocab list -> no member
            return jnp.zeros((V, 1), jnp.bool_)
        m = row_ids == vref[0]
        for k in range(1, vref.shape[0]):
            m = jnp.logical_or(m, row_ids == vref[k])
        return m

    ms_m, eng_m, chi_m = member(ms_ref), member(eng_ref), member(chi_ref)
    l0 = lang_ref[0:1, :]
    l1 = lang_ref[1:2, :]
    l2 = lang_ref[2:3, :]
    l3 = lang_ref[3:4, :]
    lang_emb = jnp.where(ms_m, l3, jnp.where(eng_m, l2, jnp.where(chi_m, l1, l0)))
    o_ref[...] = tok_ref[...] + lang_emb


def fuse_token_language_tables(tok_table, lang_table, ms_vocab, eng_vocab, chi_vocab):
    V, E = tok_table.shape
    return pl.pallas_call(
        _fuse_tables_kernel,
        out_shape=jax.ShapeDtypeStruct((V, E), jnp.float32),
        grid_spec=pltpu.PrefetchScalarGridSpec(
            num_scalar_prefetch=3,           # ms / eng / chi id lists -> SMEM
            grid=(1,),
            in_specs=[pl.BlockSpec((V, E), lambda i, *_: (0, 0)),
                      pl.BlockSpec((4, E), lambda i, *_: (0, 0))],
            out_specs=pl.BlockSpec((V, E), lambda i, *_: (0, 0)),
        ),
    )(ms_vocab.astype(jnp.int32), eng_vocab.astype(jnp.int32),
      chi_vocab.astype(jnp.int32),
      tok_table.astype(jnp.float32), lang_table.astype(jnp.float32))


# ----------------------------------------------------------------------------
# Fused forward: lane-dense gather + PE add
# ----------------------------------------------------------------------------
def _gather_add_kernel(ids_ref,                  # scalar prefetch: (B*S,) ids in SMEM
                       tokT_ref, pe_ref,         # (V,128) fused table, (tile_r,128) PE
                       o_ref,                    # (tile_r,128) output slab
                       *, tokens_per_row: int, embed: int):
    i = pl.program_id(0)
    tile_r = o_ref.shape[0]
    base_tok = i * tile_r * tokens_per_row       # first flat token of this tile

    # Lane-group masks hoisted out of the row loop (JAX does not CSE broadcasts).
    lane_grp = lax.broadcasted_iota(jnp.int32, (1, 128), 1) // embed
    masks = [lane_grp == p for p in range(1, tokens_per_row)]

    def body(t, carry):
        tok0 = base_tok + t * tokens_per_row
        # Real row gather: dynamic sublane slice of the lane-tiled fused table;
        # every load / select / add / store below is a full 128-lane vector.
        # NOTE: out-of-range ids clamp instead of raising (torch would error).
        row = tokT_ref[pl.ds(ids_ref[tok0], 1), :]
        for p in range(1, tokens_per_row):
            rp = tokT_ref[pl.ds(ids_ref[tok0 + p], 1), :]
            row = jnp.where(masks[p - 1], rp, row)
        o_ref[pl.ds(t, 1), :] = row + pe_ref[pl.ds(t, 1), :]
        return carry

    lax.fori_loop(0, tile_r, body, 0, unroll=8)


def _pick_fwd_tile(rows_per_seq: int, total_rows: int, block_budget_bytes: int) -> int:
    # pe + out blocks, double-buffered, f32 x 128 lanes each.
    max_rows = max(8, block_budget_bytes // (4 * 128 * 4))

    def ok(t, need_even):
        if rows_per_seq % t != 0:
            return False
        if not (t % 8 == 0 or t == rows_per_seq):
            return False
        n = total_rows // t
        if need_even and total_rows >= 16:
            return n >= 2 and n % 2 == 0      # keep both v7x TensorCores busy
        return True

    for need_even in (True, False):
        for t in range(min(rows_per_seq, max_rows), 0, -1):
            if ok(t, need_even):
                return t
    return rows_per_seq


def mixed_xlm_embedding(sequence, tok_table, lang_table, pe_table,
                        ms_vocab, eng_vocab, chi_vocab, use_language_emb=True):
    """token_emb[ids] + language_emb[lang_id(ids)] + pe[pos]  (Dropout = identity)."""
    B, S = sequence.shape
    V, E = tok_table.shape
    assert pe_table.shape == (S, E), (
        "torch broadcasts (B,S,E)+(1,max_len,E): requires seq_len == max_len")
    assert 128 % E == 0 and (S * E) % 128 == 0, "lane-dense packing needs 128 % embed == 0"
    # TODO(synk): for embed sizes that do not divide 128, fall back to an un-packed
    # (tile_m, E) gather kernel.

    tokens_per_row = 128 // E
    rows_per_seq = (S * E) // 128
    total_rows = B * rows_per_seq

    # ---- one-time O(V*E) prep (would be cached at module init in practice) ----
    if use_language_emb:
        fused = fuse_token_language_tables(tok_table, lang_table,
                                           ms_vocab, eng_vocab, chi_vocab)
    else:
        fused = (tok_table + lang_table[0:1, :]).astype(jnp.float32)  # lang_id == 0
    # Lane-tiled copy so each gathered row is a full 128-lane vector (layout plumbing).
    tok_tiled = jnp.tile(fused, (1, tokens_per_row))                   # (V, 128)
    pe_flat = pe_table.reshape(rows_per_seq, 128)                      # lane-dense PE slab
    ids = sequence.reshape(B * S).astype(jnp.int32)                    # -> SMEM via prefetch

    # ---- VMEM-aware tiling + explicit limit ----------------------------------
    vmem_cap = _vmem_capacity_bytes()
    tile_r = _pick_fwd_tile(rows_per_seq, total_rows,
                            block_budget_bytes=min(8 * 2**20, vmem_cap // 8))
    n_tiles = total_rows // tile_r
    tiles_per_seq = rows_per_seq // tile_r

    vmem_needed = (V * 128 * 4) * 2 + (tile_r * 128 * 4) * 2 * 2   # table(x2) + pe/out(x2 each)
    vmem_limit = int(min(max(2 * vmem_needed, 16 * 2**20), max(16 * 2**20, vmem_cap // 2)))

    out_flat = pl.pallas_call(
        functools.partial(_gather_add_kernel, tokens_per_row=tokens_per_row, embed=E),
        out_shape=jax.ShapeDtypeStruct((total_rows, 128), jnp.float32),
        grid_spec=pltpu.PrefetchScalarGridSpec(
            num_scalar_prefetch=1,                      # ids -> SMEM
            grid=(n_tiles,),
            in_specs=[
                # TODO(synk): for realistic vocab sizes keep this table in HBM
                # (memory_space=pl.ANY) and DMA-gather rows, or single-buffer the
                # constant-index block with pipeline_mode=pl.Buffered(1) (v7x VMEM).
                pl.BlockSpec((V, 128), lambda i, *_: (0, 0)),                        # fused table
                pl.BlockSpec((tile_r, 128), lambda i, *_: (i % tiles_per_seq, 0)),   # PE rows
            ],
            out_specs=pl.BlockSpec((tile_r, 128), lambda i, *_: (i, 0)),
        ),
        compiler_params=pltpu.CompilerParams(
            dimension_semantics=("parallel",),
            vmem_limit_bytes=vmem_limit,
        ),
    )(ids, tok_tiled, pe_flat)

    # Dropout(p=0.1) is identity at inference.
    # TODO(synk): training-mode dropout would use pltpu.prng_seed / prng_random_bits.
    return out_flat.reshape(B, S, E)


# ----------------------------------------------------------------------------
# Demo + correctness check
# ----------------------------------------------------------------------------
if __name__ == "__main__":
    key = jax.random.PRNGKey(0)
    k_tok, k_lang, k_seq = jax.random.split(key, 3)

    vocab_size, embed_size, seq_len, batch = 128, 32, 256, 2

    # Embedding tables (row 0 zeroed, mirroring nn.Embedding padding_idx=0).
    tok_table = (0.02 * jax.random.normal(k_tok, (vocab_size, embed_size),
                                          jnp.float32)).at[0].set(0.0)
    lang_table = (0.02 * jax.random.normal(k_lang, (4, embed_size),
                                           jnp.float32)).at[0].set(0.0)

    # id 35 is in both eng and ms to exercise torch precedence (ms > eng > chi).
    ms_vocab = jnp.array([5, 6, 7, 8, 9, 35], jnp.int32)
    eng_vocab = jnp.array([20, 21, 22, 23, 24, 25, 35], jnp.int32)
    chi_vocab = jnp.array([40, 41, 42, 43, 44, 45], jnp.int32)

    sequence = jax.random.randint(k_seq, (batch, seq_len), 0, vocab_size,
                                  dtype=jnp.int32)

    # --- "module init": positional table built once by a Pallas kernel --------
    pe_table = jax.block_until_ready(make_positional_table(embed_size, seq_len))

    # --- forward ----------------------------------------------------------------
    out = mixed_xlm_embedding(sequence, tok_table, lang_table, pe_table,
                              ms_vocab, eng_vocab, chi_vocab)
    out = jax.block_until_ready(out)

    # --- reference (torch-faithful formulae, float64 PE) -------------------------
    pos = np.arange(seq_len, dtype=np.float64)[:, None]
    col = np.arange(embed_size, dtype=np.float64)[None, :]
    scale = 10000.0 ** (-2.0 * col / embed_size)
    phase = np.where(np.arange(embed_size) % 2 == 0, 0.0, math.pi / 2.0)
    pe_ref = np.sin(pos * scale + phase).astype(np.float32)
    np.testing.assert_allclose(np.asarray(pe_table), pe_ref, atol=2e-4, rtol=2e-4)

    seq_np = np.asarray(sequence)
    lang_ids = np.zeros_like(seq_np)
    lang_ids[np.isin(seq_np, np.asarray(chi_vocab))] = 1
    lang_ids[np.isin(seq_np, np.asarray(eng_vocab))] = 2
    lang_ids[np.isin(seq_np, np.asarray(ms_vocab))] = 3
    ref = (np.asarray(tok_table)[seq_np]
           + np.asarray(lang_table)[lang_ids]
           + pe_ref[None, :, :])

    assert out.shape == (batch, seq_len, embed_size) and out.dtype == jnp.float32
    np.testing.assert_allclose(np.asarray(out), ref, atol=1e-3, rtol=1e-3)

    print("KERNEL_OK")
</pallas_src>

<mosaic_0001>
module attributes {stable_mosaic.version = 11 : i64} {
  func.func @_pe_flat_kernel(%arg0: i32, %arg1: memref<1x128xf32, #tpu.memory_space<vmem>>, %arg2: memref<1x128xf32, #tpu.memory_space<vmem>>, %arg3: memref<32x128xf32, #tpu.memory_space<vmem>>) attributes {dimension_semantics = [#tpu.dimension_semantics<parallel>], iteration_bounds = array<i64: 2>, scalar_prefetch = 0 : i64, scratch_operands = 0 : i64, tpu.core_type = #tpu.core_type<tc>, window_params = [{pipeline_mode = #tpu.pipeline_mode<synchronous>, transform_indices = @transform_0, window_bounds = array<i64: 1, 128>}, {pipeline_mode = #tpu.pipeline_mode<synchronous>, transform_indices = @transform_1, window_bounds = array<i64: 1, 128>}, {transform_indices = @transform_2, window_bounds = array<i64: 32, 128>}]} {
    %c32_i32 = arith.constant 32 : i32
    %0 = arith.muli %arg0, %c32_i32 : i32
    %1 = tpu.iota {dimensions = array<i32: 0>} : vector<32x1xi32>
    %2 = vector.broadcast %0 : i32 to vector<32x1xi32>
    %3 = arith.addi %2, %1 : vector<32x1xi32>
    %c4_i32 = arith.constant 4 : i32
    %4 = vector.broadcast %c4_i32 : i32 to vector<32x1xi32>
    %5 = arith.muli %3, %4 : vector<32x1xi32>
    %6 = arith.sitofp %5 : vector<32x1xi32> to vector<32x1xf32>
    %c0 = arith.constant 0 : index
    %c0_0 = arith.constant 0 : index
    %7 = vector.load %arg1[%c0, %c0_0] : memref<1x128xf32, #tpu.memory_space<vmem>>, vector<1x128xf32>
    %8 = vector.broadcast %6 : vector<32x1xf32> to vector<32x128xf32>
    %9 = vector.broadcast %7 : vector<1x128xf32> to vector<32x128xf32>
    %10 = arith.mulf %8, %9 : vector<32x128xf32>
    %c0_1 = arith.constant 0 : index
    %c0_2 = arith.constant 0 : index
    %11 = vector.load %arg2[%c0_1, %c0_2] : memref<1x128xf32, #tpu.memory_space<vmem>>, vector<1x128xf32>
    %12 = vector.broadcast %11 : vector<1x128xf32> to vector<32x128xf32>
    %13 = arith.addf %10, %12 : vector<32x128xf32>
    %14 = math.sin %13 : vector<32x128xf32>
    %c0_3 = arith.constant 0 : index
    %c0_4 = arith.constant 0 : index
    %15 = vector.load %arg3[%c0_3, %c0_4] : memref<32x128xf32, #tpu.memory_space<vmem>>, vector<32x128xf32>
    tpu.vector_store %arg3[%c0_3, %c0_4], %14 {strides = array<i32>} : memref<32x128xf32, #tpu.memory_space<vmem>>, vector<32x128xf32>,
    return
  }
  func.func @transform_0(%arg0: i32) -> (i32, i32) {
    %c0_i32 = arith.constant 0 : i32
    %c0_i32_0 = arith.constant 0 : i32
    %c0_i32_1 = arith.constant 0 : i32
    return %c0_i32, %c0_i32_0 : i32, i32
  }
  func.func @transform_1(%arg0: i32) -> (i32, i32) {
    %c0_i32 = arith.constant 0 : i32
    %c0_i32_0 = arith.constant 0 : i32
    %c0_i32_1 = arith.constant 0 : i32
    return %c0_i32, %c0_i32_0 : i32, i32
  }
  func.func @transform_2(%arg0: i32) -> (i32, i32) {
    %c0_i32 = arith.constant 0 : i32
    %c0_i32_0 = arith.constant 0 : i32
    return %arg0, %c0_i32 : i32, i32
  }
}

</mosaic_0001>

<bundles_post_ra>
// kernel: tpu_custom_call.1
= control target key start
LH: loop header
LB: loop body
LE: loop exit
PB: predicated region body
PF: predicated region fallthrough
CT: control target
= control target key end

     0   :  { %7 = vsyncpa [#allocation3], 0  ;;  %s1320_s0 = inlined_call_operand.hbm [shape: f32[1,128], index: 0, kind: input, shape index: {}]   ;;  %s1321_s1 = inlined_call_operand.vmem [shape: f32[1,128], index: 1, kind: input, shape index: {}]   ;;  %s1322_s2 = inlined_call_operand.hbm [shape: f32[64,128], index: 2, kind: output, shape index: {}]  }
   0x1   :  { %8 = vsyncpa [#allocation4], 0 }
   0x2   :  { %10 = vsyncpa [#allocation4 + $0x1], 0  ;;  %s911_s9 = smov 0   ;;  %s913_s10 = smov 0  }
   0x3   :  { %s915_s11 = smov 0   ;;  %s917_s12 = smov 0  }
   0x4 LB: > { %s932_s13 = sadd.s32 4294967295, %s884_s12   ;;  %s673_s14 = sadd.s32 4294967294, %s884_s12   ;;  %s884_s12 = sphi %s917_s12, %s1333_s12   ;;  %s880_s11 = sphi %s915_s11, %s1332_s11   ;;  %s876_s10 = sphi %s913_s10, %s1331_s10   ;;  %s872_s9 = sphi %s911_s9, %s1330_s9  }
   0x5   : > { %s936_s15 = sadd.s32 1, %s884_s12   ;;  %s65_s16 = sadd.s32 1, %s880_s11 }
   0x6   : > { %s62_s17 = ssub.s32 %s884_s12, %s936_s15  ;;  %p75_p0 = scmp.ne.s32.totalorder %s880_s11, %s876_s10 }
   0x7   : > { %p63_p1 = scmp.eq.s32.totalorder %s62_s17, 0  ;;  %p76_p2 = scmp.eq.s32.totalorder %s932_s13, 1 }
   0x8   : > { %p81_p3 = scmp.ne.s32.totalorder %s876_s10, %s872_s9  ;;  %p82_p4 = scmp.eq.s32.totalorder %s673_s14, 1 }
   0x9   : > { %s947_s18 = scalar_select %p63_p1, %s880_s11, %s65_s16  }
   0xa   : > { %p949_p5 = por %p76_p2, %p75_p0  ;;  %p953_p6 = por %p82_p4, %p81_p3 }
   0xb   : > { %p674_p7 = scmp.ge.s32.totalorder %s884_s12, 1  ;;  %p89_p8 = scmp.lt.s32.totalorder %s884_s12, 3 }
   0xc   : > { %p734_p9 = scmp.eq.s32.totalorder %s932_s13, 0  ;;  %s886_s22 = smov [#allocation2]  }
   0xd   : > { %p960_p10 = pnand %p674_p7, %p89_p8  ;;  %s102_s23 = sshll.u32 %s886_s22, 4  ;;  %s103_s23 = int_to_ptr.vmem [resolvable:$true] %s102_s23 }
   0xe   : > { %s805_s24 = scalar_lea.vmem %s103_s23, 16  ;;  %s812_s25 = scalar_lea.vmem %s103_s23, 32 }
   0xf   : > { %p726_p11 = pneg %p960_p10  ;;  %p806_p0 = scmp.ne.s32.totalorder %s103_s23, %s805_s24 }
  0x10   : > { %p813_p3 = scmp.lt.s32.totalorder %s103_s23, %s103_s23  ;;  %p814_p4 = scmp.lt.s32.totalorder %s812_s25, %s805_s24 }
  0x11   : > { %p727_p12 = pnand %p734_p9, %p726_p11 }
  0x12   : > { %p815_p7 = por %p814_p4, %p813_p3 }
  0x13   : > { %p796_p13 = pneg %p727_p12 }
  0x15   : > { %p808_p1 = pnand %p806_p0, %p796_p13 }
  0x17   : > { %p809_p2 = pneg %p808_p1 }
  0x19   : > { %p816_p8 = pnand %p815_p7, %p809_p2 }
  0x1b   : > { %819 = shalt.err (!%p816_p8)
}
  0x1c   : > { %729 = dma.hbm_to_vmem [thread:$0]  (!%p727_p12), %s1320_s0, 16, %s103_s23, [#allocation3]  }
  0x1d   : > { %118 = sbr.rel (%p960_p10) target bundleno = 202 (0xca), region = 28 }
  0x22   : > { %863 = dma.done.wait (%p734_p9), [#allocation3], 16  }
  0x23   : > { %865 = vsyncadd (%p734_p9), [#allocation3], 4294967280  ;;  %s679_s28 = sshll.u32 %s932_s13, 5  ;;  %v137_v0 = vlaneseq  ;;  %v680_v9 = vld [vmem:[#allocation2] ss:$0 sm:$0xff]  ;;  %s132_s3 = sand.u32 1, %s876_s10  }
  0x24   : > { %v142_v1 = vstv %s679_s28  ;;  %v981_v14 = vld [vmem:[%s1321_s1] ss:$0 sm:$0xff]  ;;  %v887_v52 = vmov 683565275   ;;  %v888_v54 = vmov 2475754826  }
  0x25   : > { %v138_v2 = vshrl.u32 %v137_v0, 7  ;;  %v889_v56 = vmov 2131351028   ;;  %v890_v58 = vmov 2102212464   ;;  %s678_s4 = sshll.u32 %s132_s3, 5 }
  0x26   : > { %v891_v60 = vmov 920167782   ;;  %s1248_s5 = scalar_lea.vmem [#allocation5], %s678_s4  ;;  %s703_s6 = sshll.u32 %s932_s13, 9 }
  0x27   : > { %v139_v3 = vadd.s32 8, %v138_v2  ;;  %v140_v4 = vadd.s32 16, %v138_v2  ;;  %v143_v5 = vadd.s32 %v142_v1, %v138_v2  ;;  %v141_v13 = vadd.s32 24, %v138_v2  ;;  %s611_s7 = sshll.u32 %s1248_s5, 4  ;;  %s1273_s16 = scalar_lea.hbm %s1322_s2, %s703_s6  ;;  %s1275_s7 = int_to_ptr.vmem [resolvable:$true] %s611_s7 }
  0x28   : > { %s1280_s13 = scalar_lea.sflag [#allocation4], %s132_s3  ;;  %s820_s17 = scalar_lea.vmem %s1275_s7, 512 }
  0x29   : > { %v144_v6 = vadd.s32 %v142_v1, %v139_v3  ;;  %v145_v7 = vadd.s32 %v142_v1, %v140_v4  ;;  %v147_v8 = vmul.u32 4, %v143_v5  ;;  %v146_v21 = vadd.s32 %v142_v1, %v141_v13  ;;  %p821_p9 = scmp.ne.s32.totalorder %s1275_s7, %s820_s17  ;;  %s893_s21 = smov [#allocation5]  }
  0x2a   : > { %v892_v4 = vmov 1326507024   ;;  %s824_s22 = sshll.u32 %s893_s21, 4  ;;  %s825_s22 = int_to_ptr.vmem [resolvable:$false] %s824_s22 }
  0x2b   : > { %v148_v10 = vmul.u32 4, %v144_v6  ;;  %v149_v11 = vmul.u32 4, %v145_v7  ;;  %v151_v12 = vcvt.s32.f32 %v147_v8  ;;  %p822_p10 = pnand %p821_p9, %p949_p5  ;;  %s826_s23 = scalar_lea.vmem %s825_s22, 1024 }
  0x2c   : > { %v150_v27 = vmul.u32 4, %v146_v21  ;;  %p827_p12 = scmp.lt.s32.totalorder %s1275_s7, %s825_s22  ;;  %p828_p13 = scmp.lt.s32.totalorder %s826_s23, %s820_s17 }
  0x2d   : > { %v152_v15 = vcvt.s32.f32 %v148_v10  ;;  %v153_v16 = vcvt.s32.f32 %v149_v11  ;;  %v162_v17 = vmul.f32 %v680_v9, %v151_v12  ;;  %p823_p11 = pneg %p822_p10 }
  0x2e   : > { %v154_v35 = vcvt.s32.f32 %v150_v27  ;;  %p829_p0 = por %p828_p13, %p827_p12 }
  0x2f   : > { %v163_v18 = vmul.f32 %v680_v9, %v152_v15  ;;  %v164_v19 = vmul.f32 %v680_v9, %v153_v16  ;;  %v984_v20 = vadd.f32 %v981_v14, %v162_v17 }
  0x30   : > { %v1001_v44 = vmul.f32 %v680_v9, %v154_v35  ;;  %p830_p1 = pnand %p829_p0, %p823_p11 }
  0x31   : > { %v987_v22 = vadd.f32 %v981_v14, %v163_v18  ;;  %v177_v23 = vand.u32 2147483647, %v984_v20  ;;  %v991_v24 = vadd.f32 %v981_v14, %v164_v19  ;;  %v180_v25 = vand.u32 2139095040, %v984_v20 }
  0x32   : > { %vm179_vm14 = vcmp.lt.s32.totalorder %v984_v20, 0 }
  0x33   : > { %v281_v26 = vand.u32 2147483647, %v987_v22  ;;  %v181_v28 = vshrl.u32 %v180_v25, 23  ;;  %v284_v29 = vand.u32 2139095040, %v987_v22  ;;  %v184_v30 = vand.u32 8388607, %v177_v23 }
  0x34   : > { %v388_v34 = vand.u32 2139095040, %v991_v24  ;;  %v385_v49 = vand.u32 2147483647, %v991_v24 }
  0x35   : > { %v288_v31 = vand.u32 8388607, %v281_v26  ;;  %v682_v32 = vadd.s32 4294967169, %v181_v28  ;;  %v285_v33 = vshrl.u32 %v284_v29, 23  ;;  %v185_v39 = vor.u32 8388608, %v184_v30 }
  0x36   : > { %v389_v38 = vshrl.u32 %v388_v34, 23 }
  0x37   : > { %v187_v36 = vadd.s32 1, %v682_v32  ;;  %v686_v37 = vadd.s32 4294967169, %v285_v33  ;;  %v289_v40 = vor.u32 8388608, %v288_v31  ;;  %v1003_v47 = vshll.u32 %v185_v39, 8 }
  0x38   : > { %v690_v42 = vadd.s32 4294967169, %v389_v38 }
  0x39   : > { %vm188_vm0 = vcmp.gt.s32.totalorder %v187_v36, 0  ;;  %v291_v41 = vadd.s32 1, %v686_v37  ;;  %v1005_v48 = vshll.u32 %v289_v40, 8 }
  0x3a   : > { %v189_v43 = vsel %vm188_vm0, %v187_v36, 0  ;;  %v1008_v50 = vadd.s32 1, %v690_v42 }
  0x3b   : > { %v190_v45 = vshrl.u32 %v189_v43, 5  ;;  %v191_v46 = vand.u32 31, %v189_v43  ;;  %vm292_vm1 = vcmp.gt.s32.totalorder %v291_v41, 0 }
  0x3c   : > { %v293_v62 = vsel %vm292_vm1, %v291_v41, 0  ;;  %vm396_vm8 = vcmp.gt.s32.totalorder %v1008_v50, 0 }
  0x3d   : > { %v192_v51 = vsub.s32 32, %v191_v46  ;;  %v194_v53 = vshll.u32 %v887_v52, %v191_v46  ;;  %v197_v55 = vshll.u32 %v888_v54, %v191_v46  ;;  %v200_v57 = vshll.u32 %v889_v56, %v191_v46 }
  0x3e   : > { %v203_v59 = vshll.u32 %v890_v58, %v191_v46  ;;  %v206_v61 = vshll.u32 %v891_v60, %v191_v46  ;;  %vm209_vm2 = vcmp.lt.s32.totalorder %v190_v45, 1  ;;  %vm210_vm3 = vcmp.lt.s32.totalorder %v190_v45, 2 }
  0x3f   : > { %v193_v63 = vshrl.u32 %v887_v52, %v192_v51  ;;  %v195_v0 = vshrl.u32 %v888_v54, %v192_v51  ;;  %v198_v1 = vshrl.u32 %v889_v56, %v192_v51  ;;  %v201_v2 = vshrl.u32 %v890_v58, %v192_v51 }
  0x40   : > { %v204_v3 = vshrl.u32 %v891_v60, %v192_v51  ;;  %v207_v5 = vshrl.u32 %v892_v4, %v192_v51  ;;  %vm211_vm4 = vcmp.lt.s32.totalorder %v190_v45, 3  ;;  %vm212_vm5 = vcmp.lt.s32.totalorder %v190_v45, 4 }
  0x41   : > { %v196_v6 = vor.u32 %v195_v0, %v194_v53  ;;  %v199_v7 = vor.u32 %v198_v1, %v197_v55  ;;  %v202_v8 = vor.u32 %v201_v2, %v200_v57  ;;  %v294_v11 = vshrl.u32 %v293_v62, 5 }
  0x42   : > { %v205_v9 = vor.u32 %v204_v3, %v203_v59  ;;  %v208_v10 = vor.u32 %v207_v5, %v206_v61  ;;  %v295_v12 = vand.u32 31, %v293_v62 }
  0x43   : > { %v213_v13 = vsel %vm209_vm2, %v193_v63, %v196_v6  ;;  %v214_v15 = vsel %vm212_vm5, %v202_v8, 2102212464  ;;  %v217_v16 = vsel %vm209_vm2, %v196_v6, %v199_v7  ;;  %v221_v17 = vsel %vm209_vm2, %v199_v7, %v202_v8 }
  0x44   : > { %v215_v18 = vsel %vm211_vm4, %v199_v7, %v214_v15  ;;  %v218_v19 = vsel %vm212_vm5, %v205_v9, 920167782  ;;  %v222_v21 = vsel %vm212_vm5, %v208_v10, 1326507024  ;;  %v296_v25 = vsub.s32 32, %v295_v12 }
  0x45   : > { %v216_v27 = vsel %vm210_vm3, %v213_v13, %v215_v18  ;;  %v219_v28 = vsel %vm211_vm4, %v202_v8, %v218_v19  ;;  %v223_v29 = vsel %vm211_vm4, %v205_v9, %v222_v21  ;;  %v298_v30 = vshll.u32 %v887_v52, %v295_v12 }
  0x46   : > { %v220_v31 = vsel %vm210_vm3, %v217_v16, %v219_v28  ;;  %v224_v32 = vsel %vm210_vm3, %v221_v17, %v223_v29  ;;  %v232_v33 = vmul.u32 %v1003_v47, %v216_v27  ;;  %v297_v34 = vshrl.u32 %v887_v52, %v296_v25 }
  0x47   : > { %v1035_v35 = vmul.u32.u64.low %v1003_v47, %v224_v32  ;;  %v1036_v36 = vmul.u32.u64.high %v1003_v47, %v224_v32, %v1035_v35  ;;  %v1039_v37 = vmul.u32.u64.low %v1003_v47, %v220_v31  ;;  %v1040_v38 = vmul.u32.u64.high %v1003_v47, %v220_v31, %v1039_v37 }
  0x48   : > { %v299_v39 = vshrl.u32 %v888_v54, %v296_v25  ;;  %v301_v40 = vshll.u32 %v888_v54, %v295_v12  ;;  %v302_v41 = vshrl.u32 %v889_v56, %v296_v25  ;;  %v304_v42 = vshll.u32 %v889_v56, %v295_v12 }
  0x49   : > { %v305_v43 = vshrl.u32 %v890_v58, %v296_v25  ;;  %v307_v45 = vshll.u32 %v890_v58, %v295_v12  ;;  %v308_v46 = vshrl.u32 %v891_v60, %v296_v25  ;;  %v310_v51 = vshll.u32 %v891_v60, %v295_v12 }
  0x4a   : > { %v300_v53 = vor.u32 %v299_v39, %v298_v30  ;;  %v303_v47 = vor.u32 %v302_v41, %v301_v40  ;;  %v311_v55 = vshrl.u32 %v892_v4, %v296_v25  ;;  %vm313_vm6 = vcmp.lt.s32.totalorder %v294_v11, 1 }
  0x4b   : > { %vm234_vm7 = vc.u32 %v1036_v36, %v1039_v37  ;;  %v235_v57 = vadd.s32 1, %v1040_v38  ;;  %v306_v59 = vor.u32 %v305_v43, %v304_v42  ;;  %v309_v61 = vor.u32 %v308_v46, %v307_v45 }
  0x4c   : > { %v312_v62 = vor.u32 %v311_v55, %v310_v51  ;;  %vm314_vm9 = vcmp.lt.s32.totalorder %v294_v11, 2  ;;  %vm315_vm10 = vcmp.lt.s32.totalorder %v294_v11, 3  ;;  %vm316_vm11 = vcmp.lt.s32.totalorder %v294_v11, 4 }
  0x4d   : > { %v236_v63 = vsel %vm234_vm7, %v235_v57, %v1040_v38  ;;  %v317_v0 = vsel %vm313_vm6, %v297_v34, %v300_v53  ;;  %v321_v1 = vsel %vm313_vm6, %v300_v53, %v303_v47  ;;  %v318_v3 = vsel %vm316_vm11, %v306_v59, 2102212464 }
  0x4e   : > { %v237_v2 = vadd.s32 %v236_v63, %v232_v33  ;;  %v322_v5 = vsel %vm316_vm11, %v309_v61, 920167782  ;;  %v325_v6 = vsel %vm313_vm6, %v303_v47, %v306_v59  ;;  %v1062_v7 = vadd.f32 %v981_v14, %v1001_v44 }
  0x4f   : > { %v319_v8 = vsel %vm315_vm10, %v303_v47, %v318_v3  ;;  %v323_v9 = vsel %vm315_vm10, %v306_v59, %v322_v5  ;;  %v326_v10 = vsel %vm316_vm11, %v312_v62, 1326507024  ;;  %v397_v16 = vsel %vm396_vm8, %v1008_v50, 0 }
  0x50   : > { %v238_v12 = vadd.s32 536870912, %v237_v2  ;;  %v324_v13 = vsel %vm314_vm9, %v321_v1, %v323_v9  ;;  %v327_v15 = vsel %vm315_vm10, %v309_v61, %v326_v10  ;;  %v320_v17 = vsel %vm314_vm9, %v317_v0, %v319_v8 }
  0x51   : > { %v328_v18 = vsel %vm314_vm9, %v325_v6, %v327_v15  ;;  %v1071_v19 = vmul.u32.u64.low %v1005_v48, %v324_v13  ;;  %v1072_v21 = vmul.u32.u64.high %v1005_v48, %v324_v13, %v1071_v19  ;;  %v392_v27 = vand.u32 8388607, %v385_v49 }
  0x52   : > { %v1075_v14 = vshrl.u32 %v238_v12, 30  ;;  %v1078_v44 = vmul.u32.u64.low %v1005_v48, %v328_v18  ;;  %v1079_v25 = vmul.u32.u64.high %v1005_v48, %v328_v18, %v1078_v44  ;;  %v399_v28 = vand.u32 31, %v397_v16 }
  0x53   : > { %v492_v50 = vand.u32 2139095040, %v1062_v7  ;;  %v336_v29 = vmul.u32 %v1005_v48, %v320_v17  ;;  %v339_v30 = vadd.s32 1, %v1072_v21  ;;  %v393_v33 = vor.u32 8388608, %v392_v27 }
  0x54   : > { %v240_v11 = vshll.u32 %v1075_v14, 30  ;;  %v400_v31 = vsub.s32 32, %v399_v28  ;;  %vm338_vm12 = vc.u32 %v1079_v25, %v1071_v19  ;;  %v402_v35 = vshll.u32 %v887_v52, %v399_v28 }
  0x55   : > { %v340_v34 = vsel %vm338_vm12, %v339_v30, %v1072_v21  ;;  %v405_v38 = vshll.u32 %v888_v54, %v399_v28  ;;  %v493_v39 = vshrl.u32 %v492_v50, 23  ;;  %v398_v43 = vshrl.u32 %v397_v16, 5 }
  0x56   : > { %v1087_v32 = vsub.s32 %v237_v2, %v240_v11  ;;  %v341_v41 = vadd.s32 %v340_v34, %v336_v29  ;;  %v403_v48 = vshrl.u32 %v888_v54, %v400_v31  ;;  %v406_v42 = vshrl.u32 %v889_v56, %v400_v31 }
  0x57   : > { %v408_v45 = vshll.u32 %v889_v56, %v399_v28  ;;  %v409_v46 = vshrl.u32 %v890_v58, %v400_v31  ;;  %v411_v51 = vshll.u32 %v890_v58, %v399_v28  ;;  %v489_v55 = vand.u32 2147483647, %v1062_v7 }
  0x58   : > { %v243_v40 = vsub.s32 0, %v1087_v32  ;;  %v342_v47 = vadd.s32 536870912, %v341_v41  ;;  %v412_v57 = vshrl.u32 %v891_v60, %v400_v31  ;;  %v414_v59 = vshll.u32 %v891_v60, %v399_v28 }
  0x59   : > { %v415_v61 = vshrl.u32 %v892_v4, %v400_v31  ;;  %v1105_v62 = vshll.u32 %v393_v33, 8  ;;  %v404_v0 = vor.u32 %v403_v48, %v402_v35  ;;  %v407_v1 = vor.u32 %v406_v42, %v405_v38 }
  0x5a   : > { %v683_v53 = vmin.u32 %v243_v40, %v1087_v32  ;;  %v694_v2 = vadd.s32 4294967169, %v493_v39  ;;  %v1107_v3 = vshrl.u32 %v342_v47, 30  ;;  %v410_v5 = vor.u32 %v409_v46, %v408_v45 }
  0x5b   : > { %v413_v6 = vor.u32 %v412_v57, %v411_v51  ;;  %vm417_vm13 = vcmp.lt.s32.totalorder %v398_v43, 1  ;;  %v233_v8 = vadd.s32 %v1039_v37, %v1036_v36  ;;  %vm419_vm15 = vcmp.lt.s32.totalorder %v398_v43, 3 }
  0x5c   : > { %v245_v63 = vclz %v683_v53  ;;  %vm420_vm0 = vcmp.lt.s32.totalorder %v398_v43, 4  ;;  %v344_v10 = vshll.u32 %v1107_v3, 30  ;;  %v401_v12 = vshrl.u32 %v887_v52, %v400_v31 }
  0x5d   : > { %v416_v13 = vor.u32 %v415_v61, %v414_v59  ;;  %v426_v15 = vsel %vm420_vm0, %v413_v6, 920167782  ;;  %vm418_vm2 = vcmp.lt.s32.totalorder %v398_v43, 2  ;;  %v425_v16 = vsel %vm417_vm13, %v404_v0, %v407_v1 }
  0x5e   : > { %v684_v9 = vadd.s32 4294967294, %v245_v63  ;;  %v499_v17 = vadd.s32 1, %v694_v2  ;;  %v1116_v21 = vsub.s32 %v341_v41, %v344_v10  ;;  %v422_v36 = vsel %vm420_vm0, %v410_v5, 2102212464 }
  0x5f   : > { %v427_v37 = vsel %vm419_vm15, %v410_v5, %v426_v15  ;;  %v429_v50 = vsel %vm417_vm13, %v407_v1, %v410_v5  ;;  %v263_v11 = vsub.s32 4, %v1075_v14  ;;  %v421_v30 = vsel %vm417_vm13, %v401_v12, %v404_v0 }
  0x60   : > { %vm685_vm1 = vcmp.lt.s32.totalorder %v684_v9, 0  ;;  %v347_v29 = vsub.s32 0, %v1116_v21  ;;  %v430_v31 = vsel %vm420_vm0, %v416_v13, 1326507024  ;;  %v423_v35 = vsel %vm419_vm15, %v407_v1, %v422_v36 }
  0x61   : > { %v248_v18 = vsel %vm685_vm1, 0, %v684_v9  ;;  %v431_v38 = vsel %vm419_vm15, %v413_v6, %v430_v31  ;;  %vm500_vm3 = vcmp.gt.s32.totalorder %v499_v17, 0  ;;  %v264_v46 = vsel %vm179_vm14, %v263_v11, %v1075_v14 }
  0x62   : > { %v249_v44 = vsub.s32 32, %v248_v18  ;;  %v250_v27 = vshll.u32 %v1087_v32, %v248_v18  ;;  %v253_v28 = vsub.s32 4294967266, %v248_v18  ;;  %v687_v39 = vmin.u32 %v347_v29, %v1116_v21 }
  0x63   : > { %v428_v32 = vsel %vm418_vm2, %v425_v16, %v427_v37  ;;  %v432_v40 = vsel %vm418_vm2, %v429_v50, %v431_v38  ;;  %v424_v53 = vsel %vm418_vm2, %v421_v30, %v423_v35  ;;  %vm1146_vm4 = vcmp.le.f32.partialorder %v177_v23, 0.7853982 }
  0x64   : > { %v251_v33 = vshrl.u32 %v233_v8, %v249_v44  ;;  %v254_v34 = vadd.s32 127, %v253_v28  ;;  %v1132_v42 = vmul.u32.u64.low %v1105_v62, %v432_v40  ;;  %v1133_v45 = vmul.u32.u64.high %v1105_v62, %v432_v40, %v1132_v42 }
  0x65   : > { %v349_v51 = vclz %v687_v39  ;;  %v1140_v59 = vmul.u32.u64.low %v1105_v62, %v428_v32  ;;  %v1141_v61 = vmul.u32.u64.high %v1105_v62, %v428_v32, %v1140_v59  ;;  %v501_v1 = vsel %vm500_vm3, %v499_v17, 0 }
  0x66   : > { %v252_v41 = vor.u32 %v251_v33, %v250_v27  ;;  %v255_v48 = vshll.u32 %v254_v34, 23  ;;  %v266_v14 = vsel %vm1146_vm4, 0, %v264_v46  ;;  %v337_v43 = vadd.s32 %v1071_v19, %v1079_v25 }
  0x67   : > { %v688_v0 = vadd.s32 4294967294, %v349_v51  ;;  %v496_v5 = vand.u32 8388607, %v489_v55  ;;  %v440_v6 = vmul.u32 %v1105_v62, %v424_v53  ;;  %vm442_vm6 = vc.u32 %v1133_v45, %v1140_v59 }
  0x68   : > { %v256_v47 = vor.u32 4788187, %v255_v48  ;;  %v259_v57 = vcvt.s32.f32 %v252_v41  ;;  %v503_v23 = vand.u32 31, %v501_v1  ;;  %v443_v10 = vadd.s32 1, %v1141_v61 }
  0x69   : > { %vm689_vm5 = vcmp.lt.s32.totalorder %v688_v0, 0  ;;  %v270_v25 = vadd.s32 3, %v266_v14  ;;  %v497_v18 = vor.u32 8388608, %v496_v5  ;;  %v1162_v44 = vshrl.u32 %v501_v1, 5 }
  0x6a   : > { %v257_v2 = vand.u32 2147483647, %v256_v47  ;;  %v352_v9 = vsel %vm689_vm5, 0, %v688_v0  ;;  %v504_v16 = vsub.s32 32, %v503_v23  ;;  %v444_v17 = vsel %vm442_vm6, %v443_v10, %v1141_v61 }
  0x6b   : > { %v353_v12 = vsub.s32 32, %v352_v9  ;;  %v354_v13 = vshll.u32 %v1116_v21, %v352_v9  ;;  %v357_v15 = vsub.s32 4294967266, %v352_v9  ;;  %v445_v37 = vadd.s32 %v444_v17, %v440_v6 }
  0x6c   : > { %v260_v8 = vmul.f32 %v259_v57, %v257_v2  ;;  %vm283_vm7 = vcmp.lt.s32.totalorder %v987_v22, 0  ;;  %v506_v28 = vshll.u32 %v887_v52, %v503_v23  ;;  %v507_v21 = vshrl.u32 %v888_v54, %v504_v16 }
  0x6d   : > { %v355_v36 = vshrl.u32 %v337_v43, %v353_v12  ;;  %v358_v62 = vadd.s32 127, %v357_v15  ;;  %v509_v50 = vshll.u32 %v888_v54, %v503_v23  ;;  %vm1175_vm8 = vcmp.le.f32.partialorder %v281_v26, 0.7853982 }
  0x6e   : > { %v261_v19 = vxor.u32 2147483648, %v260_v8  ;;  %v446_v33 = vadd.s32 536870912, %v445_v37  ;;  %v510_v34 = vshrl.u32 %v889_v56, %v504_v16  ;;  %v512_v35 = vshll.u32 %v889_v56, %v503_v23 }
  0x6f   : > { %v356_v30 = vor.u32 %v355_v36, %v354_v13  ;;  %v359_v31 = vshll.u32 %v358_v62, 23  ;;  %v513_v54 = vshrl.u32 %v890_v58, %v504_v16  ;;  %v367_v26 = vsub.s32 4, %v1107_v3 }
  0x70   : > { %v262_v27 = vsel %vm179_vm14, %v261_v19, %v260_v8  ;;  %v1182_v32 = vshrl.u32 %v446_v33, 30  ;;  %v515_v40 = vshll.u32 %v890_v58, %v503_v23  ;;  %v516_v41 = vshrl.u32 %v891_v60, %v504_v16 }
  0x71   : > { %v265_v11 = vsel %vm1146_vm4, %v984_v20, %v262_v27  ;;  %v360_v38 = vor.u32 4788187, %v359_v31  ;;  %v363_v39 = vcvt.s32.f32 %v356_v30  ;;  %v518_v48 = vshll.u32 %v891_v60, %v503_v23 }
  0x72   : > { %778 = vcosq.f32 %v265_v11  ;;  %v448_v46 = vshll.u32 %v1182_v32, 30  ;;  %v519_v56 = vshrl.u32 %v892_v4, %v504_v16  ;;  %vm521_vm9 = vcmp.lt.s32.totalorder %v1162_v44, 1 }
  0x73   : > { %780 = vsinq.f32 %v265_v11  ;;  %v361_v42 = vand.u32 2147483647, %v360_v38  ;;  %v508_v51 = vor.u32 %v507_v21, %v506_v28  ;;  %v511_v53 = vor.u32 %v510_v34, %v509_v50 }
  0x74   : > { %v514_v47 = vor.u32 %v513_v54, %v512_v35  ;;  %v517_v57 = vor.u32 %v516_v41, %v515_v40  ;;  %v1191_v63 = vsub.s32 %v445_v37, %v448_v46  ;;  %v520_v0 = vor.u32 %v519_v56, %v518_v48 }
  0x75   : > { %v364_v61 = vmul.f32 %v363_v39, %v361_v42  ;;  %vm524_vm10 = vcmp.lt.s32.totalorder %v1162_v44, 4  ;;  %v271_v58 = vand.u32 3, %v270_v25  ;;  %v505_v60 = vshrl.u32 %v887_v52, %v504_v16 }
  0x76   : > { %vm523_vm11 = vcmp.lt.s32.totalorder %v1162_v44, 3  ;;  %v537_v1 = vshll.u32 %v497_v18, 8  ;;  %v368_v4 = vsel %vm283_vm7, %v367_v26, %v1107_v3  ;;  %v451_v14 = vsub.s32 0, %v1191_v63 }
  0x77   : > { %v365_v2 = vxor.u32 2147483648, %v364_v61  ;;  %v526_v43 = vsel %vm524_vm10, %v514_v47, 2102212464  ;;  %vm522_vm12 = vcmp.lt.s32.totalorder %v1162_v44, 2  ;;  %v529_v5 = vsel %vm521_vm9, %v508_v51, %v511_v53 }
  0x78   : > { %v530_v6 = vsel %vm524_vm10, %v517_v57, 920167782  ;;  %v534_v23 = vsel %vm524_vm10, %v520_v0, 1326507024  ;;  %v691_v8 = vmin.u32 %v451_v14, %v1191_v63  ;;  %v533_v3 = vsel %vm521_vm9, %v511_v53, %v514_v47 }
  0x79   : > { %v366_v52 = vsel %vm283_vm7, %v365_v2, %v364_v61  ;;  %v531_v9 = vsel %vm523_vm11, %v514_v47, %v530_v6  ;;  %v525_v12 = vsel %vm521_vm9, %v505_v60, %v508_v51  ;;  %v527_v13 = vsel %vm523_vm11, %v511_v53, %v526_v43 }
  0x7a   : > { %v369_v10 = vsel %vm1175_vm8, %v987_v22, %v366_v52  ;;  %v535_v15 = vsel %vm523_vm11, %v517_v57, %v534_v23  ;;  %vm269_vm13 = vweird.f32 %v984_v20  ;;  %v453_v16 = vclz %v691_v8 }
  0x7b   : > { %782 = vcosq.f32 %v369_v10  ;;  %v532_v19 = vsel %vm522_vm12, %v529_v5, %v531_v9  ;;  %vm276_vm14 = vcmp.eq.s32.totalorder %v271_v58, 2  ;;  %v370_v25 = vsel %vm1175_vm8, 0, %v368_v4 }
  0x7c   : > { %784 = vsinq.f32 %v369_v10  ;;  %v536_v17 = vsel %vm522_vm12, %v533_v3, %v535_v15  ;;  %v692_v36 = vadd.s32 4294967294, %v453_v16  ;;  %v528_v62 = vsel %vm522_vm12, %v525_v12, %v527_v13 }
  0x7d   : > { %v1229_v37 = vmul.u32.u64.low %v537_v1, %v536_v17  ;;  %v1230_v27 = vmul.u32.u64.high %v537_v1, %v536_v17, %v1229_v37  ;;  %vm273_vm15 = vcmp.eq.s32.totalorder %v271_v58, 0  ;;  %vm272_vm0 = vcmp.lt.s32.totalorder %v271_v58, 2 }
  0x7e   : > { %v1234_v50 = vmul.u32.u64.low %v537_v1, %v532_v19  ;;  %v1235_v11 = vmul.u32.u64.high %v537_v1, %v532_v19, %v1234_v50  ;;  %v441_v30 = vadd.s32 %v1140_v59, %v1133_v45  ;;  %vm693_vm1 = vcmp.lt.s32.totalorder %v692_v36, 0 }
  0x7f   : > { %v779_v18 = vpop.eup %778  ;;  %v374_v31 = vadd.s32 3, %v370_v25  ;;  %v456_v33 = vsel %vm693_vm1, 0, %v692_v36  ;;  %v544_v34 = vmul.u32 %v537_v1, %v528_v62  ;;  %vm373_vm6 = vweird.f32 %v987_v22 }
  0x80   : > { %v781_v28 = vpop.eup %780  ;;  %v277_v21 = vxor.u32 2147483648, %v779_v18  ;;  %v457_v54 = vsub.s32 32, %v456_v33  ;;  %v458_v38 = vshll.u32 %v1191_v63, %v456_v33  ;;  %v461_v39 = vsub.s32 4294967266, %v456_v33 }
  0x81   : > { %v274_v29 = vxor.u32 2147483648, %v781_v28  ;;  %vm546_vm2 = vc.u32 %v1230_v27, %v1234_v50  ;;  %v547_v40 = vadd.s32 1, %v1235_v11  ;;  %v375_v48 = vand.u32 3, %v374_v31 }
  0x82   : > { %v278_v44 = vsel %vm276_vm14, %v277_v21, %v781_v28  ;;  %v459_v59 = vshrl.u32 %v441_v30, %v457_v54  ;;  %v462_v41 = vadd.s32 127, %v461_v39  ;;  %vm387_vm7 = vcmp.lt.s32.totalorder %v991_v24, 0 }
  0x83   : > { %v275_v35 = vsel %vm273_vm15, %v779_v18, %v274_v29  ;;  %v548_v42 = vsel %vm546_vm2, %v547_v40, %v1235_v11  ;;  %vm380_vm3 = vcmp.eq.s32.totalorder %v375_v48, 2  ;;  %vm377_vm4 = vcmp.eq.s32.totalorder %v375_v48, 0 }
  0x84   : > { %v279_v26 = vsel %vm272_vm0, %v275_v35, %v278_v44  ;;  %v460_v46 = vor.u32 %v459_v59, %v458_v38  ;;  %v463_v56 = vshll.u32 %v462_v41, 23  ;;  %v549_v51 = vadd.s32 %v548_v42, %v544_v34 }
  0x85   : > { %v280_v45 = vsel %vm269_vm13, nan, %v279_v26  ;;  %vm376_vm5 = vcmp.lt.s32.totalorder %v375_v48, 2  ;;  %v471_v43 = vsub.s32 4, %v1182_v32  ;;  %vm386_vm8 = vcmp.le.f32.partialorder %v385_v49, 0.7853982 }
  0x86   : > { %593 = vst [vmem:[%s1248_s5] sm:$0xff] %v280_v45  ;;  %v464_v53 = vor.u32 4788187, %v463_v56  ;;  %v467_v47 = vcvt.s32.f32 %v460_v46  ;;  %v550_v57 = vadd.s32 536870912, %v549_v51  ;;  %v545_v49 = vadd.s32 %v1234_v50, %v1230_v27 }
  0x87   : > { %v472_v22 = vsel %vm387_vm7, %v471_v43, %v1182_v32  ;;  %vm477_vm13 = vweird.f32 %v991_v24  ;;  %vm491_vm14 = vcmp.lt.s32.totalorder %v1062_v7, 0  ;;  %vm490_vm15 = vcmp.le.f32.partialorder %v489_v55, 0.7853982 }
  0x88   : > { %v783_v61 = vpop.eup %782  ;;  %v465_v0 = vand.u32 2147483647, %v464_v53  ;;  %v551_v58 = vshrl.u32 %v550_v57, 30  ;;  %v474_v12 = vsel %vm386_vm8, 0, %v472_v22 }
  0x89   : > { %v785_v63 = vpop.eup %784  ;;  %v381_v20 = vxor.u32 2147483648, %v783_v61  ;;  %v478_v16 = vadd.s32 3, %v474_v12 }
  0x8a   : > { %v378_v60 = vxor.u32 2147483648, %v785_v63  ;;  %v468_v2 = vmul.f32 %v467_v47, %v465_v0  ;;  %v552_v4 = vshll.u32 %v551_v58, 30  ;;  %v575_v38 = vsub.s32 4, %v551_v58 }
  0x8b   : > { %v382_v1 = vsel %vm380_vm3, %v381_v20, %v785_v63  ;;  %v479_v36 = vand.u32 3, %v478_v16  ;;  %vm581_vm3 = vweird.f32 %v1062_v7 }
  0x8c   : > { %v379_v14 = vsel %vm377_vm4, %v783_v61, %v378_v60  ;;  %v469_v6 = vxor.u32 2147483648, %v468_v2  ;;  %v553_v23 = vsub.s32 %v549_v51, %v552_v4  ;;  %v576_v40 = vsel %vm491_vm14, %v575_v38, %v551_v58 }
  0x8d   : > { %v383_v5 = vsel %vm376_vm5, %v379_v14, %v382_v1  ;;  %vm484_vm10 = vcmp.eq.s32.totalorder %v479_v36, 2  ;;  %vm481_vm11 = vcmp.eq.s32.totalorder %v479_v36, 0  ;;  %vm480_vm12 = vcmp.lt.s32.totalorder %v479_v36, 2 }
  0x8e   : > { %v384_v52 = vsel %vm373_vm6, nan, %v383_v5  ;;  %v470_v8 = vsel %vm387_vm7, %v469_v6, %v468_v2  ;;  %v555_v9 = vsub.s32 0, %v553_v23  ;;  %v578_v45 = vsel %vm490_vm15, 0, %v576_v40 }
  0x8f   : > { %594 = vst [vmem:[%s1248_s5 + $0x8] sm:$0xff] %v384_v52  ;;  %v473_v3 = vsel %vm386_vm8, %v991_v24, %v470_v8  ;;  %v582_v59 = vadd.s32 3, %v578_v45 }
  0x90   : > { %786 = vcosq.f32 %v473_v3  ;;  %v695_v10 = vmin.u32 %v555_v9, %v553_v23 }
  0x91   : > { %788 = vsinq.f32 %v473_v3  ;;  %v583_v41 = vand.u32 3, %v582_v59 }
  0x92   : > { %v557_v13 = vclz %v695_v10 }
  0x93   : > { %vm588_vm0 = vcmp.eq.s32.totalorder %v583_v41, 2  ;;  %vm585_vm1 = vcmp.eq.s32.totalorder %v583_v41, 0  ;;  %vm584_vm2 = vcmp.lt.s32.totalorder %v583_v41, 2 }
  0x94   : > { %v696_v15 = vadd.s32 4294967294, %v557_v13 }
  0x96   : > { %vm697_vm9 = vcmp.lt.s32.totalorder %v696_v15, 0 }
  0x97   : > { %v560_v19 = vsel %vm697_vm9, 0, %v696_v15 }
  0x98   : > { %v561_v25 = vsub.s32 32, %v560_v19  ;;  %v562_v17 = vshll.u32 %v553_v23, %v560_v19  ;;  %v565_v18 = vsub.s32 4294967266, %v560_v19 }
  0x9a   : > { %v563_v62 = vshrl.u32 %v545_v49, %v561_v25  ;;  %v566_v32 = vadd.s32 127, %v565_v18 }
  0x9c   : > { %v564_v37 = vor.u32 %v563_v62, %v562_v17  ;;  %v567_v28 = vshll.u32 %v566_v32, 23 }
  0x9d   : > { %v787_v21 = vpop.eup %786 }
  0x9e   : > { %v789_v11 = vpop.eup %788  ;;  %v485_v29 = vxor.u32 2147483648, %v787_v21  ;;  %v568_v30 = vor.u32 4788187, %v567_v28  ;;  %v571_v44 = vcvt.s32.f32 %v564_v37 }
  0x9f   : > { %v482_v27 = vxor.u32 2147483648, %v789_v11 }
  0xa0   : > { %v486_v50 = vsel %vm484_vm10, %v485_v29, %v789_v11  ;;  %v569_v31 = vand.u32 2147483647, %v568_v30 }
  0xa1   : > { %v483_v33 = vsel %vm481_vm11, %v787_v21, %v482_v27 }
  0xa2   : > { %v487_v34 = vsel %vm480_vm12, %v483_v33, %v486_v50  ;;  %v572_v35 = vmul.f32 %v571_v44, %v569_v31 }
  0xa3   : > { %v488_v54 = vsel %vm477_vm13, nan, %v487_v34 }
  0xa4   : > { %v573_v39 = vxor.u32 2147483648, %v572_v35  ;;  %595 = vst [vmem:[%s1248_s5 + $0x10] sm:$0xff] %v488_v54 }
  0xa6   : > { %v574_v26 = vsel %vm491_vm14, %v573_v39, %v572_v35 }
  0xa7   : > { %v577_v24 = vsel %vm490_vm15, %v1062_v7, %v574_v26 }
  0xa8   : > { %790 = vcosq.f32 %v577_v24 }
  0xa9   : > { %792 = vsinq.f32 %v577_v24 }
  0xb5   : > { %v791_v48 = vpop.eup %790 }
  0xb6   : > { %v793_v42 = vpop.eup %792  ;;  %v589_v55 = vxor.u32 2147483648, %v791_v48 }
  0xb7   : > { %v586_v46 = vxor.u32 2147483648, %v793_v42 }
  0xb8   : > { %v590_v56 = vsel %vm588_vm0, %v589_v55, %v793_v42 }
  0xb9   : > { %v587_v51 = vsel %vm585_vm1, %v791_v48, %v586_v46 }
  0xba   : > { %v591_v53 = vsel %vm584_vm2, %v587_v51, %v590_v56 }
  0xbb   : > { %v592_v47 = vsel %vm581_vm3, nan, %v591_v53 }
  0xbc   : > { %596 = vst [vmem:[%s1248_s5 + $0x18] sm:$0xff] %v592_v47 }
  0xbd   : > { %833 = shalt.err (!%p830_p1)
}
  0xbe   : > { %s834_s24 = scalar_lea.hbm %s1273_s16, 512  ;;  %s838_s27 = scalar_lea.hbm %s1322_s2, 1024 }
  0xbf   : > { %p835_p2 = scmp.ne.s32.totalorder %s1273_s16, %s834_s24  ;;  %p839_p7 = scmp.lt.s32.totalorder %s1273_s16, %s1322_s2 }
  0xc0   : > { %p840_p8 = scmp.lt.s32.totalorder %s838_s27, %s834_s24 }
  0xc1   : > { %p836_p3 = pnand %p835_p2, %p949_p5 }
  0xc2   : > { %p841_p9 = por %p840_p8, %p839_p7 }
  0xc3   : > { %p837_p4 = pneg %p836_p3 }
  0xc5   : > { %p842_p10 = pnand %p841_p9, %p837_p4 }
  0xc7   : > { %845 = shalt.err (!%p842_p10)
}
  0xc8   : > { %s894_s30 = smov 128   ;;  %s895_s3 = smov 8  }
  0xc9   : > { %724 = dma.vmem_to_hbm [thread:$0]  (%p949_p5), %s1275_s7, 512, %s1273_s16, %s1280_s13, %s894_s30, %s894_s30, %s895_s3  }
  0xca PF: > { %p736_p11 = scmp.ge.s32.totalorder %s884_s12, 2  ;;  %s626_s4 = sand.u32 1, %s872_s9  }
  0xcb   : > { %s627_s5 = scalar_lea.sflag [#allocation4], %s626_s4 }
  0xcc   : > { %p731_p12 = pnand %p736_p11, %p953_p6 }
  0xce   : > { %p732_p13 = pneg %p731_p12 }
  0xd0   : > { %867 = dma.done.wait (%p732_p13), %s627_s5, 512  }
  0xd1   : > { %869 = vsyncadd (%p732_p13), %s627_s5, 4294966784  ;;  %p13_p0 = scmp.ge.s32.totalorder %s936_s15, 4   ;;  %s1330_s9 = smov %s876_s10 }
  0xd2   : > { %s1331_s10 = smov %s880_s11  ;;  %s1332_s11 = smov %s947_s18 }
  0xd3   : > { %s1333_s12 = smov %s936_s15  ;;  %15 = sbr.rel (!%p13_p0) target bundleno = 4 (0x4), region = 65 }
  0xd8   :  { %632 = vsyncpa [#allocation3], 1 }
  0xd9   :  { %634 = vsyncpa [#allocation3 + $0x1], 1 }
  0xda   :  { %635 = vsyncpa [#allocation4], 1 }
  0xdb   :  { %637 = vsyncpa [#allocation4 + $0x1], 1 }

</bundles_post_ra>
